<compile_context>
chip_gen: v7x
topology: tpu7x:2x2x1
jax: 0.10.0
libtpu: 0.0.40
codegen_flags: <defaults>
</compile_context>

<pallas_src>
import functools
import numpy as np

import jax
import jax.numpy as jnp
from jax import lax
from jax.experimental import pallas as pl
from jax.experimental.pallas import tpu as pltpu


# Safe on v7x (64 MiB physical VMEM); raise to ~96-100 MiB on v5e/v6e.
_VMEM_LIMIT = 56 * 1024 * 1024


def _dot(a, b):
    # (m, k) @ (k, n) -> (m, n), f32 accumulation on the MXU.
    return jnp.dot(a, b, preferred_element_type=jnp.float32)


def _dot_nt(a, b):
    # a: (m, k), b: (n, k) -> (m, n), contracting over the last dim of both.
    return lax.dot_general(a, b, (((1,), (1,)), ((), ())),
                           preferred_element_type=jnp.float32)


# ------------------- kernel 1: latent / positional caches ------------------ #

def mla_latent_kernel(hs_ref, cos_ref, sin_ref, w_ref, g_ref, b_ref,
                      c_out_ref, pe_out_ref, *, eps, kv_lora, qk_rope):
    h = hs_ref[0]                                        # (tk, H) bf16

    # one fused projection: [latent | rope | rotated-rope]
    proj = _dot(h, w_ref[...])                           # (tk, C + 2R) f32
    kv = proj[:, :kv_lora]
    kp = proj[:, kv_lora:kv_lora + qk_rope]
    kp_rot = proj[:, kv_lora + qk_rope:]

    # kv_norm: full LayerNorm over kv_lora (matches nn.LayerNorm)
    mu = jnp.mean(kv, axis=-1, keepdims=True)
    var = jnp.mean(jnp.square(kv - mu), axis=-1, keepdims=True)
    c = (kv - mu) * lax.rsqrt(var + eps) * g_ref[...] + b_ref[...]

    # RoPE (rotate-half folded into the weights host-side)
    pe = kp * cos_ref[...] + kp_rot * sin_ref[...]

    c_out_ref[0] = c.astype(c_out_ref.dtype)
    pe_out_ref[0] = pe.astype(pe_out_ref.dtype)


# ----------------- kernel 2: flash attention over latents ------------------ #

def mla_attn_kernel(hs_ref, cosq_ref, sinq_ref, c_ref, pe_ref,
                    wq_ref, wkn_ref, wkvv_ref, wout_ref,
                    out_ref,
                    q_abs_s, q_pe_s, m_s, l_s, acc_s,
                    *, num_heads, block_q, qk_nope, qk_rope):
    t = pl.program_id(2)
    nt = pl.num_programs(2)
    sq = block_q
    nh = num_heads
    r_off = nh * qk_nope
    rr_off = r_off + nh * qk_rope

    # ---- prologue: once per (batch, q-block): project q, absorb, RoPE ----
    @pl.when(t == 0)
    def _prologue():
        m_s[...] = jnp.full_like(m_s, -jnp.inf)
        l_s[...] = jnp.zeros_like(l_s)
        acc_s[...] = jnp.zeros_like(acc_s)

        hb = hs_ref[0]                                   # (sq, H) bf16
        # ONE fused projection for all heads: [nope | rope | rotated-rope]
        q_all = _dot(hb, wq_ref[...])                    # (sq, nh*(nope+2R)) f32
        cos_q = cosq_ref[...]                            # (sq, R)  scale folded
        sin_q = sinq_ref[...]                            # (sq, R)  scale folded

        # static (fully unrolled) head loop: absorption + RoPE, bf16 scratch
        for h in range(nh):
            qn = q_all[:, h * qk_nope:(h + 1) * qk_nope].astype(jnp.bfloat16)
            qa = _dot(qn, wkn_ref[h])                    # (sq, C) f32, scale folded
            qr = q_all[:, r_off + h * qk_rope:r_off + (h + 1) * qk_rope]
            qrr = q_all[:, rr_off + h * qk_rope:rr_off + (h + 1) * qk_rope]
            qp = qr * cos_q + qrr * sin_q                # RoPE'd + scaled q_pe
            q_abs_s[h * sq:(h + 1) * sq, :] = qa.astype(jnp.bfloat16)
            q_pe_s[h * sq:(h + 1) * sq, :] = qp.astype(jnp.bfloat16)

    # ---- main step: one kv-block, online softmax for all heads at once ----
    c = c_ref[0]                                         # (tk, C) bf16
    pe = pe_ref[0]                                       # (tk, R) bf16

    # scale is already folded into q_abs_s / q_pe_s; scratch is bf16 (no cast)
    s = _dot_nt(q_abs_s[...], c) + _dot_nt(q_pe_s[...], pe)  # (nh*sq, tk) f32

    m_prev = m_s[...]
    m_new = jnp.maximum(m_prev, jnp.max(s, axis=-1, keepdims=True))
    alpha = jnp.exp(m_prev - m_new)
    p = jnp.exp(s - m_new)                               # (nh*sq, tk) f32
    l_s[...] = alpha * l_s[...] + jnp.sum(p, axis=-1, keepdims=True)
    acc_s[...] = alpha * acc_s[...] + _dot(p.astype(jnp.bfloat16), c)
    m_s[...] = m_new

    # ---- epilogue: normalize, un-absorb V, single fused out-projection ----
    @pl.when(t == nt - 1)
    def _epilogue():
        xc_all = (acc_s[...] / l_s[...]).astype(jnp.bfloat16)   # (nh*sq, C)
        xv_heads = []
        for h in range(nh):                              # static, unrolled
            xc_h = xc_all[h * sq:(h + 1) * sq, :]
            xv_heads.append(_dot_nt(xc_h, wkvv_ref[h]).astype(jnp.bfloat16))
        xv_all = jnp.concatenate(xv_heads, axis=-1)      # (sq, nh*v) bf16
        o = _dot(xv_all, wout_ref[...])                  # (sq, H) f32
        out_ref[0] = o.astype(out_ref.dtype)


# -------------------------------- wrapper ---------------------------------- #

def mixed_latent_attention(hidden_states, cos, sin, params, *,
                           num_heads, qk_nope, qk_rope, v_head, kv_lora,
                           scale, eps=1e-5, block_q=128, block_k=256):
    B, S, H = hidden_states.shape
    block_q = min(block_q, S)
    block_k = min(block_k, S)
    assert S % block_q == 0 and S % block_k == 0
    wq_T, wkva_T, gamma, beta, wkvb_nope, wkvb_v, wout_T = params
    qk_head = qk_nope + qk_rope
    d2 = qk_rope // 2
    out_dtype = hidden_states.dtype

    # --------- host-side weight/table prep (bf16 MXU operands) -------------
    hs_b = hidden_states.astype(jnp.bfloat16)

    # q projection packed as [all-heads nope | all-heads rope | rotated rope]
    wq_h = wq_T.reshape(H, num_heads, qk_head)
    wq_nope = wq_h[:, :, :qk_nope].reshape(H, num_heads * qk_nope)
    wq_rope = wq_h[:, :, qk_nope:]                                  # (H, nh, R)
    wq_rope_rot = jnp.concatenate([-wq_rope[..., d2:], wq_rope[..., :d2]], -1)
    wq_big = jnp.concatenate(
        [wq_nope,
         wq_rope.reshape(H, num_heads * qk_rope),
         wq_rope_rot.reshape(H, num_heads * qk_rope)],
        axis=1).astype(jnp.bfloat16)

    # kv_proj_a packed as [latent | rope | rotated rope]
    w_lat = wkva_T[:, :kv_lora]
    w_pe = wkva_T[:, kv_lora:]
    w_pe_rot = jnp.concatenate([-w_pe[:, d2:], w_pe[:, :d2]], axis=1)
    wkv_big = jnp.concatenate([w_lat, w_pe, w_pe_rot], axis=1).astype(jnp.bfloat16)

    # absorbed nope weight with the softmax scale folded in; V / out weights
    wkn_scaled = (wkvb_nope * scale).astype(jnp.bfloat16)           # (nh, nope, C)
    wkvv_b = wkvb_v.astype(jnp.bfloat16)                            # (nh, v, C)
    wout_flat = wout_T.astype(jnp.bfloat16)                         # (nh*v, H)

    cos_f = cos.astype(jnp.float32)
    sin_f = sin.astype(jnp.float32)
    cos_q = cos_f * scale          # softmax scale folded into q RoPE tables
    sin_q = sin_f * scale
    gamma_f = gamma.astype(jnp.float32)
    beta_f = beta.astype(jnp.float32)

    nq = S // block_q
    nt = S // block_k

    # ---------------- kernel 1: c / pe latent caches (bf16) ----------------
    c_cache, pe_cache = pl.pallas_call(
        functools.partial(mla_latent_kernel, eps=eps, kv_lora=kv_lora,
                          qk_rope=qk_rope),
        out_shape=(jax.ShapeDtypeStruct((B, S, kv_lora), jnp.bfloat16),
                   jax.ShapeDtypeStruct((B, S, qk_rope), jnp.bfloat16)),
        grid_spec=pltpu.PrefetchScalarGridSpec(
            num_scalar_prefetch=0,
            grid=(B, nt),
            in_specs=[
                pl.BlockSpec((1, block_k, H), lambda b, t: (b, t, 0)),
                pl.BlockSpec((block_k, qk_rope), lambda b, t: (t, 0)),
                pl.BlockSpec((block_k, qk_rope), lambda b, t: (t, 0)),
                pl.BlockSpec(wkv_big.shape, lambda b, t: (0, 0)),
                pl.BlockSpec((1, kv_lora), lambda b, t: (0, 0)),
                pl.BlockSpec((1, kv_lora), lambda b, t: (0, 0)),
            ],
            out_specs=(pl.BlockSpec((1, block_k, kv_lora), lambda b, t: (b, t, 0)),
                       pl.BlockSpec((1, block_k, qk_rope), lambda b, t: (b, t, 0))),
        ),
        compiler_params=pltpu.CompilerParams(
            dimension_semantics=("parallel", "parallel"),
            vmem_limit_bytes=_VMEM_LIMIT),
    )(hs_b, cos_f, sin_f, wkv_big, gamma_f, beta_f)

    # --------------- kernel 2: flash attention over latents ----------------
    kernel = functools.partial(
        mla_attn_kernel, num_heads=num_heads, block_q=block_q,
        qk_nope=qk_nope, qk_rope=qk_rope)

    out = pl.pallas_call(
        kernel,
        out_shape=jax.ShapeDtypeStruct((B, S, H), out_dtype),
        grid_spec=pltpu.PrefetchScalarGridSpec(
            num_scalar_prefetch=0,
            grid=(B, nq, nt),
            in_specs=[
                pl.BlockSpec((1, block_q, H), lambda b, q, t: (b, q, 0)),
                pl.BlockSpec((block_q, qk_rope), lambda b, q, t: (q, 0)),
                pl.BlockSpec((block_q, qk_rope), lambda b, q, t: (q, 0)),
                pl.BlockSpec((1, block_k, kv_lora), lambda b, q, t: (b, t, 0)),
                pl.BlockSpec((1, block_k, qk_rope), lambda b, q, t: (b, t, 0)),
                pl.BlockSpec(wq_big.shape, lambda b, q, t: (0, 0)),
                pl.BlockSpec(wkn_scaled.shape, lambda b, q, t: (0, 0, 0)),
                pl.BlockSpec(wkvv_b.shape, lambda b, q, t: (0, 0, 0)),
                pl.BlockSpec(wout_flat.shape, lambda b, q, t: (0, 0)),
            ],
            out_specs=pl.BlockSpec((1, block_q, H), lambda b, q, t: (b, q, 0)),
            scratch_shapes=[
                pltpu.VMEM((num_heads * block_q, kv_lora), jnp.bfloat16),  # q_abs
                pltpu.VMEM((num_heads * block_q, qk_rope), jnp.bfloat16),  # q_pe
                pltpu.VMEM((num_heads * block_q, 1), jnp.float32),         # m
                pltpu.VMEM((num_heads * block_q, 1), jnp.float32),         # l
                pltpu.VMEM((num_heads * block_q, kv_lora), jnp.float32),   # acc
            ],
        ),
        compiler_params=pltpu.CompilerParams(
            dimension_semantics=("parallel", "parallel", "arbitrary"),
            vmem_limit_bytes=_VMEM_LIMIT),
    )(hs_b, cos_q, sin_q, c_cache, pe_cache,
      wq_big, wkn_scaled, wkvv_b, wout_flat)
    return out


# ------------------------- pure-JAX reference (f32) ------------------------ #

def _rope_ref(x, cos, sin):
    d2 = x.shape[-1] // 2
    x1, x2 = x[..., :d2], x[..., d2:]
    rot = jnp.concatenate([-x2, x1], axis=-1)
    extra = x.ndim - 3
    c = cos.reshape((1, cos.shape[0]) + (1,) * extra + (cos.shape[1],))
    s = sin.reshape((1, sin.shape[0]) + (1,) * extra + (sin.shape[1],))
    return x * c + rot * s


def reference(hidden, cos, sin, params, *, num_heads, qk_nope, qk_rope,
              v_head, kv_lora, scale, eps=1e-5):
    wq_T, wkva_T, gamma, beta, wkvb_nope, wkvb_v, wout_T = params
    B, S, H = hidden.shape
    qk_head = qk_nope + qk_rope

    q = hidden @ wq_T
    q = q.reshape(B, S, num_heads, qk_head)
    q_nope, q_pe = q[..., :qk_nope], q[..., qk_nope:]
    q_pe = _rope_ref(q_pe, cos, sin)

    kva = hidden @ wkva_T
    kv, k_pe = kva[..., :kv_lora], kva[..., kv_lora:]
    k_pe = _rope_ref(k_pe, cos, sin)

    mu = jnp.mean(kv, axis=-1, keepdims=True)
    var = jnp.mean((kv - mu) ** 2, axis=-1, keepdims=True)
    c = (kv - mu) / jnp.sqrt(var + eps) * gamma[0] + beta[0]

    q_abs = jnp.einsum('bshd,hdc->bshc', q_nope, wkvb_nope)
    scores = (jnp.einsum('bshc,btc->bsht', q_abs, c)
              + jnp.einsum('bshr,btr->bsht', q_pe, k_pe)) * scale
    w = jax.nn.softmax(scores.astype(jnp.float32), axis=-1).astype(q.dtype)
    x = jnp.einsum('bsht,btc->bshc', w, c)
    x = jnp.einsum('bshc,hdc->bshd', x, wkvb_v)
    x = x.reshape(B, S, num_heads * v_head)
    return x @ wout_T


# ---------------------------------- main ------------------------------------ #

def _xavier(key, shape, gain=1.0):
    fan_out, fan_in = shape
    bound = gain * np.sqrt(6.0 / (fan_in + fan_out))
    return jax.random.uniform(key, shape, jnp.float32, -bound, bound)


if __name__ == "__main__":
    B, S = 2, 16
    hidden_size = 64
    num_heads = 2
    qk_nope, qk_rope, v_head = 32, 16, 32
    kv_lora = 64
    qk_head = qk_nope + qk_rope
    scale = qk_head ** -0.5 * 1.0        # attention_scale_factor = 1.0

    key = jax.random.PRNGKey(0)
    k_x, k_q, k_a, k_b, k_o = jax.random.split(key, 5)

    hidden = jax.random.normal(k_x, (B, S, hidden_size), jnp.float32)

    # torch-layout weights (out, in), then transpose/reshape for the kernel
    wq = _xavier(k_q, (num_heads * qk_head, hidden_size))
    wkva = _xavier(k_a, (kv_lora + qk_rope, hidden_size))
    wkvb = _xavier(k_b, (num_heads * (qk_nope + v_head), kv_lora))
    wout = _xavier(k_o, (hidden_size, num_heads * v_head),
                   gain=1.0 / np.sqrt(2.0))

    wq_T = wq.T
    wkva_T = wkva.T
    wkvb_r = wkvb.reshape(num_heads, qk_nope + v_head, kv_lora)
    wkvb_nope = wkvb_r[:, :qk_nope, :]
    wkvb_v = wkvb_r[:, qk_nope:, :]
    wout_T = wout.T
    gamma = jnp.ones((1, kv_lora), jnp.float32)
    beta = jnp.zeros((1, kv_lora), jnp.float32)

    # rotary tables for positions 0..S-1 (position_ids=None, start_pos=0)
    inv_freq = 1.0 / (10000.0 ** (np.arange(0, qk_rope, 2) / qk_rope))
    pos = np.arange(S)
    ang = pos[:, None] * inv_freq[None, :]
    cos = jnp.asarray(np.concatenate([np.cos(ang), np.cos(ang)], axis=-1),
                      jnp.float32)
    sin = jnp.asarray(np.concatenate([np.sin(ang), np.sin(ang)], axis=-1),
                      jnp.float32)

    params = (wq_T, wkva_T, gamma, beta, wkvb_nope, wkvb_v, wout_T)
    kwargs = dict(num_heads=num_heads, qk_nope=qk_nope, qk_rope=qk_rope,
                  v_head=v_head, kv_lora=kv_lora, scale=scale)

    out = mixed_latent_attention(hidden, cos, sin, params,
                                 block_q=128, block_k=256, **kwargs)
    out = jax.block_until_ready(out)

    ref = jax.block_until_ready(reference(hidden, cos, sin, params, **kwargs))
    # bf16 MXU inputs (f32 accumulation) vs f32 reference -> loosened tolerance
    np.testing.assert_allclose(np.asarray(out), np.asarray(ref),
                               rtol=5e-2, atol=5e-2)
    print("KERNEL_OK")
</pallas_src>

<mosaic_0001>
module attributes {stable_mosaic.version = 11 : i64} {
  func.func @mla_latent_kernel(%arg0: i32, %arg1: i32, %arg2: memref<1x16x64xbf16, #tpu.memory_space<vmem>>, %arg3: memref<16x16xf32, #tpu.memory_space<vmem>>, %arg4: memref<16x16xf32, #tpu.memory_space<vmem>>, %arg5: memref<64x96xbf16, #tpu.memory_space<vmem>>, %arg6: memref<1x64xf32, #tpu.memory_space<vmem>>, %arg7: memref<1x64xf32, #tpu.memory_space<vmem>>, %arg8: memref<1x16x64xbf16, #tpu.memory_space<vmem>>, %arg9: memref<1x16x16xbf16, #tpu.memory_space<vmem>>) attributes {dimension_semantics = [#tpu.dimension_semantics<parallel>, #tpu.dimension_semantics<parallel>], iteration_bounds = array<i64: 2, 1>, scalar_prefetch = 0 : i64, scratch_operands = 0 : i64, tpu.core_type = #tpu.core_type<tc>, window_params = [{transform_indices = @transform_0, window_bounds = array<i64: 1, 16, 64>}, {transform_indices = @transform_1, window_bounds = array<i64: 16, 16>}, {transform_indices = @transform_2, window_bounds = array<i64: 16, 16>}, {pipeline_mode = #tpu.pipeline_mode<synchronous>, transform_indices = @transform_3, window_bounds = array<i64: 64, 96>}, {pipeline_mode = #tpu.pipeline_mode<synchronous>, transform_indices = @transform_4, window_bounds = array<i64: 1, 64>}, {pipeline_mode = #tpu.pipeline_mode<synchronous>, transform_indices = @transform_5, window_bounds = array<i64: 1, 64>}, {transform_indices = @transform_6, window_bounds = array<i64: 1, 16, 64>}, {transform_indices = @transform_7, window_bounds = array<i64: 1, 16, 16>}]} {
    %c0 = arith.constant 0 : index
    %c0_0 = arith.constant 0 : index
    %c0_1 = arith.constant 0 : index
    %0 = vector.load %arg2[%c0, %c0_0, %c0_1] : memref<1x16x64xbf16, #tpu.memory_space<vmem>>, vector<1x16x64xbf16>
    %1 = vector.shape_cast %0 : vector<1x16x64xbf16> to vector<16x64xbf16>
    %c0_2 = arith.constant 0 : index
    %c0_3 = arith.constant 0 : index
    %2 = vector.load %arg5[%c0_2, %c0_3] : memref<64x96xbf16, #tpu.memory_space<vmem>>, vector<64x96xbf16>
    %cst = arith.constant dense<0.000000e+00> : vector<16x96xf32>
    %3 = tpu.matmul %1, %2, %cst {dimension_numbers = #tpu.dot_dimension_numbers<[1], [0], [0], [1], [0, 0, 1, 1], [], []>} : vector<16x64xbf16>, vector<64x96xbf16>, vector<16x96xf32> -> vector<16x96xf32>
    %4 = vector.extract_strided_slice %3 {offsets = [0, 0], sizes = [16, 64], strides = [1, 1]} : vector<16x96xf32> to vector<16x64xf32>
    %5 = vector.extract_strided_slice %3 {offsets = [0, 64], sizes = [16, 16], strides = [1, 1]} : vector<16x96xf32> to vector<16x16xf32>
    %6 = vector.extract_strided_slice %3 {offsets = [0, 80], sizes = [16, 16], strides = [1, 1]} : vector<16x96xf32> to vector<16x16xf32>
    %cst_4 = arith.constant dense<0.000000e+00> : vector<16xf32>
    %7 = vector.multi_reduction <add>, %4, %cst_4 [1] : vector<16x64xf32> to vector<16xf32>
    %8 = vector.shape_cast %7 : vector<16xf32> to vector<16x1xf32>
    %cst_5 = arith.constant 6.400000e+01 : f32
    %9 = vector.broadcast %cst_5 : f32 to vector<16x1xf32>
    %10 = arith.divf %8, %9 : vector<16x1xf32>
    %11 = vector.broadcast %10 : vector<16x1xf32> to vector<16x64xf32>
    %12 = arith.subf %4, %11 : vector<16x64xf32>
    %13 = arith.mulf %12, %12 : vector<16x64xf32>
    %cst_6 = arith.constant dense<0.000000e+00> : vector<16xf32>
    %14 = vector.multi_reduction <add>, %13, %cst_6 [1] : vector<16x64xf32> to vector<16xf32>
    %15 = vector.shape_cast %14 : vector<16xf32> to vector<16x1xf32>
    %cst_7 = arith.constant 6.400000e+01 : f32
    %16 = vector.broadcast %cst_7 : f32 to vector<16x1xf32>
    %17 = arith.divf %15, %16 : vector<16x1xf32>
    %18 = vector.broadcast %10 : vector<16x1xf32> to vector<16x64xf32>
    %19 = arith.subf %4, %18 : vector<16x64xf32>
    %cst_8 = arith.constant 9.99999974E-6 : f32
    %20 = vector.broadcast %cst_8 : f32 to vector<16x1xf32>
    %21 = arith.addf %17, %20 : vector<16x1xf32>
    %22 = math.rsqrt %21 : vector<16x1xf32>
    %23 = vector.broadcast %22 : vector<16x1xf32> to vector<16x64xf32>
    %24 = arith.mulf %19, %23 : vector<16x64xf32>
    %c0_9 = arith.constant 0 : index
    %c0_10 = arith.constant 0 : index
    %25 = vector.load %arg6[%c0_9, %c0_10] : memref<1x64xf32, #tpu.memory_space<vmem>>, vector<1x64xf32>
    %26 = vector.broadcast %25 : vector<1x64xf32> to vector<16x64xf32>
    %27 = arith.mulf %24, %26 : vector<16x64xf32>
    %c0_11 = arith.constant 0 : index
    %c0_12 = arith.constant 0 : index
    %28 = vector.load %arg7[%c0_11, %c0_12] : memref<1x64xf32, #tpu.memory_space<vmem>>, vector<1x64xf32>
    %29 = vector.broadcast %28 : vector<1x64xf32> to vector<16x64xf32>
    %30 = arith.addf %27, %29 : vector<16x64xf32>
    %c0_13 = arith.constant 0 : index
    %c0_14 = arith.constant 0 : index
    %31 = vector.load %arg3[%c0_13, %c0_14] : memref<16x16xf32, #tpu.memory_space<vmem>>, vector<16x16xf32>
    %32 = arith.mulf %5, %31 : vector<16x16xf32>
    %c0_15 = arith.constant 0 : index
    %c0_16 = arith.constant 0 : index
    %33 = vector.load %arg4[%c0_15, %c0_16] : memref<16x16xf32, #tpu.memory_space<vmem>>, vector<16x16xf32>
    %34 = arith.mulf %6, %33 : vector<16x16xf32>
    %35 = arith.addf %32, %34 : vector<16x16xf32>
    %36 = arith.truncf %30 : vector<16x64xf32> to vector<16x64xbf16>
    %c0_17 = arith.constant 0 : index
    %c0_18 = arith.constant 0 : index
    %c0_19 = arith.constant 0 : index
    %37 = vector.load %arg8[%c0_17, %c0_18, %c0_19] : memref<1x16x64xbf16, #tpu.memory_space<vmem>>, vector<1x16x64xbf16>
    %38 = vector.shape_cast %37 : vector<1x16x64xbf16> to vector<16x64xbf16>
    %39 = vector.shape_cast %36 : vector<16x64xbf16> to vector<1x16x64xbf16>
    tpu.vector_store %arg8[%c0_17, %c0_18, %c0_19], %39 {strides = array<i32>} : memref<1x16x64xbf16, #tpu.memory_space<vmem>>, vector<1x16x64xbf16>,
    %40 = arith.truncf %35 : vector<16x16xf32> to vector<16x16xbf16>
    %c0_20 = arith.constant 0 : index
    %c0_21 = arith.constant 0 : index
    %c0_22 = arith.constant 0 : index
    %41 = vector.load %arg9[%c0_20, %c0_21, %c0_22] : memref<1x16x16xbf16, #tpu.memory_space<vmem>>, vector<1x16x16xbf16>
    %42 = vector.shape_cast %41 : vector<1x16x16xbf16> to vector<16x16xbf16>
    %43 = vector.shape_cast %40 : vector<16x16xbf16> to vector<1x16x16xbf16>
    tpu.vector_store %arg9[%c0_20, %c0_21, %c0_22], %43 {strides = array<i32>} : memref<1x16x16xbf16, #tpu.memory_space<vmem>>, vector<1x16x16xbf16>,
    return
  }
  func.func @transform_0(%arg0: i32, %arg1: i32) -> (i32, i32, i32) {
    %c0_i32 = arith.constant 0 : i32
    %c0_i32_0 = arith.constant 0 : i32
    return %arg0, %arg1, %c0_i32 : i32, i32, i32
  }
  func.func @transform_1(%arg0: i32, %arg1: i32) -> (i32, i32) {
    %c0_i32 = arith.constant 0 : i32
    %c0_i32_0 = arith.constant 0 : i32
    return %arg1, %c0_i32 : i32, i32
  }
  func.func @transform_2(%arg0: i32, %arg1: i32) -> (i32, i32) {
    %c0_i32 = arith.constant 0 : i32
    %c0_i32_0 = arith.constant 0 : i32
    return %arg1, %c0_i32 : i32, i32
  }
  func.func @transform_3(%arg0: i32, %arg1: i32) -> (i32, i32) {
    %c0_i32 = arith.constant 0 : i32
    %c0_i32_0 = arith.constant 0 : i32
    %c0_i32_1 = arith.constant 0 : i32
    return %c0_i32, %c0_i32_0 : i32, i32
  }
  func.func @transform_4(%arg0: i32, %arg1: i32) -> (i32, i32) {
    %c0_i32 = arith.constant 0 : i32
    %c0_i32_0 = arith.constant 0 : i32
    %c0_i32_1 = arith.constant 0 : i32
    return %c0_i32, %c0_i32_0 : i32, i32
  }
  func.func @transform_5(%arg0: i32, %arg1: i32) -> (i32, i32) {
    %c0_i32 = arith.constant 0 : i32
    %c0_i32_0 = arith.constant 0 : i32
    %c0_i32_1 = arith.constant 0 : i32
    return %c0_i32, %c0_i32_0 : i32, i32
  }
  func.func @transform_6(%arg0: i32, %arg1: i32) -> (i32, i32, i32) {
    %c0_i32 = arith.constant 0 : i32
    %c0_i32_0 = arith.constant 0 : i32
    return %arg0, %arg1, %c0_i32 : i32, i32, i32
  }
  func.func @transform_7(%arg0: i32, %arg1: i32) -> (i32, i32, i32) {
    %c0_i32 = arith.constant 0 : i32
    %c0_i32_0 = arith.constant 0 : i32
    return %arg0, %arg1, %c0_i32 : i32, i32, i32
  }
}

</mosaic_0001>

<bundles_post_ra>
// kernel: tpu_custom_call.1
= control target key start
LH: loop header
LB: loop body
LE: loop exit
PB: predicated region body
PF: predicated region fallthrough
CT: control target
= control target key end

     0   :  { %s1606_s0 = inlined_call_operand.hbm [shape: bf16[2,16,64], index: 0, kind: input, shape index: {}]   ;;  %s1607_s1 = inlined_call_operand.hbm [shape: f32[16,16], index: 1, kind: input, shape index: {}]   ;;  %s1608_s2 = inlined_call_operand.hbm [shape: f32[16,16], index: 2, kind: input, shape index: {}]   ;;  %s1609_s3 = inlined_call_operand.hbm [shape: bf16[64,96], index: 3, kind: input, shape index: {}]   ;;  %s1610_s4 = inlined_call_operand.vmem [shape: f32[1,64], index: 4, kind: input, shape index: {}]   ;;  %s1611_s5 = inlined_call_operand.vmem [shape: f32[1,64], index: 5, kind: input, shape index: {}]   ;;  %s1612_s6 = inlined_call_operand.hbm [shape: bf16[2,16,64], index: 6, kind: output, shape index: {0}]   ;;  %s1613_s7 = inlined_call_operand.hbm [shape: bf16[2,16,16], index: 7, kind: output, shape index: {1}]  }
   0x1   :  { %1621 = sst [smem:[#allocation20_spill]] %s1611_s5 }
   0x2   :  { %1622 = sst [smem:[#allocation21_spill]] %s1612_s6 }
   0x3   :  { %13 = vsyncpa [#allocation3], 0 }
   0x4   :  { %15 = vsyncpa [#allocation3 + $0x1], 0 }
   0x5   :  { %16 = vsyncpa [#allocation6], 0 }
   0x6   :  { %17 = vsyncpa [#allocation9], 0 }
   0x7   :  { %18 = vsyncpa [#allocation4], 0 }
   0x8   :  { %20 = vsyncpa [#allocation4 + $0x1], 0 }
   0x9   :  { %21 = vsyncpa [#allocation12], 0 }
   0xa   :  { %23 = vsyncpa [#allocation12 + $0x1], 0  ;;  %s1249_s24 = smov 0   ;;  %s1251_s25 = smov 0  }
   0xb   :  { %s1253_s26 = smov 0   ;;  %s1255_s27 = smov 0  }
   0xc   :  { %s1257_s28 = smov 0   ;;  %s1259_s29 = smov 0  }
   0xd LB: > { %1623 = sst [smem:[#allocation18_spill]] %s1171_s24  ;;  %s777_s30 = sadd.s32 4294967295, %s1191_s29   ;;  %s1191_s29 = sphi %s1259_s29, %s29_s29   ;;  %s1187_s28 = sphi %s1257_s28, %s1648_s28   ;;  %s1183_s27 = sphi %s1255_s27, %s1647_s27   ;;  %s1179_s26 = sphi %s1253_s26, %s1646_s26   ;;  %s1175_s25 = sphi %s1251_s25, %s1645_s25   ;;  %s1171_s24 = sphi %s1249_s24, %s1644_s24  }
   0xe   : > { %s778_s8 = sadd.s32 4294967294, %s1191_s29   ;;  %p63_p0 = scmp.ne.s32.totalorder %s1175_s25, %s1171_s24 }
   0xf   : > { %p1283_p1 = scmp.eq.s32.totalorder %s777_s30, 0  ;;  %p1287_p2 = scmp.eq.s32.totalorder %s777_s30, 1 }
  0x10   : > { %p210_p3 = scmp.eq.s32.totalorder %s778_s8, 1  ;;  %p779_p5 = scmp.ge.s32.totalorder %s1191_s29, 1 }
  0x11   : > { %s1624_s9 = scalar_select %p1283_p1, 1, 0 }
  0x12   : > { %s1625_s10 = scalar_select %p1287_p2, 1, 0 }
  0x13   : > { %p1293_p4 = por %p1283_p1, %p63_p0  ;;  %p1298_p6 = por %p210_p3, %p63_p0 }
  0x14   : > { %p245_p7 = scmp.lt.s32.totalorder %s1191_s29, 3  ;;  %s1193_s14 = smov [#allocation5]  }
  0x15   : > { %s1626_s11 = scalar_select %p1293_p4, 1, 0 }
  0x16   : > { %s1627_s12 = scalar_select %p1298_p6, 1, 0 }
  0x17   : > { %p1303_p8 = pnand %p779_p5, %p245_p7  ;;  %s260_s15 = sshll.u32 %s1193_s14, 4  ;;  %s1307_s15 = int_to_ptr.vmem [resolvable:$true] %s260_s15 }
  0x18   : > { %1628 = sst [smem:[#allocation19_spill]] %s1627_s12  ;;  %s1194_s17 = smov [#allocation7]  }
  0x19   : > { %s1629_s13 = scalar_select %p1303_p8, 1, 0 }
  0x1a   : > { %p856_p9 = pneg %p1303_p8  ;;  %s276_s18 = sshll.u32 %s1194_s17, 4  ;;  %s1318_s18 = int_to_ptr.vmem [resolvable:$true] %s276_s18 }
  0x1b   : > { %s1195_s19 = smov [#allocation8]   ;;  %s955_s23 = scalar_lea.hbm %s1607_s1, 256 }
  0x1c   : > { %p1314_p11 = pnand %p856_p9, %p1283_p1  ;;  %s1320_s20 = sshll.u32 %s1195_s19, 4  ;;  %s290_s20 = int_to_ptr.vmem [resolvable:$true] %s1320_s20 }
  0x1d   : > { %p956_p12 = scmp.ne.s32.totalorder %s1607_s1, %s955_s23  ;;  %p962_p5 = scmp.lt.u32.totalorder %s955_s23, %s1607_s1 }
  0x1e   : > { %p1330_p13 = pneg %p1314_p11 }
  0x20   : > { %p958_p0 = pnand %p1330_p13, %p956_p12 }
  0x22   : > { %p959_p3 = pneg %p958_p0 }
  0x24   : > { %p964_p7 = pnand %p962_p5, %p959_p3 }
  0x26   : > { %967 = shalt.err (!%p964_p7)
}
  0x27   : > { %s968_s21 = scalar_lea.vmem %s1307_s15, 256  ;;  %p976_p1 = scmp.lt.s32.totalorder %s1307_s15, %s1307_s15 }
  0x28   : > { %p969_p9 = scmp.ne.s32.totalorder %s1307_s15, %s968_s21  ;;  %p977_p4 = scmp.lt.s32.totalorder %s968_s21, %s968_s21 }
  0x2a   : > { %p971_p10 = pnand %p969_p9, %p1330_p13  ;;  %p978_p12 = por %p977_p4, %p976_p1 }
  0x2c   : > { %p972_p6 = pneg %p971_p10 }
  0x2e   : > { %p979_p0 = pnand %p978_p12, %p972_p6 }
  0x30   : > { %982 = shalt.err (!%p979_p0)
}
  0x31   : > { %s1196_s22 = smov 128   ;;  %s1197_s23 = smov 8  }
  0x32   : > { %859 = dma.hbm_to_vmem [thread:$0]  (!%p1314_p11), %s1607_s1, 256, %s1307_s15, [#allocation6], %s1196_s22, %s1196_s22, %s1197_s23  }
  0x33   : > { %s983_s12 = scalar_lea.hbm %s1608_s2, 256 }
  0x34   : > { %p984_p1 = scmp.ne.s32.totalorder %s1608_s2, %s983_s12  ;;  %p990_p10 = scmp.lt.u32.totalorder %s983_s12, %s1608_s2 }
  0x36   : > { %p986_p4 = pnand %p984_p1, %p1330_p13 }
  0x38   : > { %p987_p6 = pneg %p986_p4 }
  0x3a   : > { %p992_p3 = pnand %p990_p10, %p987_p6 }
  0x3c   : > { %995 = shalt.err (!%p992_p3)
}
  0x3d   : > { %s996_s15 = scalar_lea.vmem %s1318_s18, 256  ;;  %p1004_p12 = scmp.lt.s32.totalorder %s1318_s18, %s1318_s18 }
  0x3e   : > { %p997_p5 = scmp.ne.s32.totalorder %s1318_s18, %s996_s15  ;;  %p1005_p0 = scmp.lt.s32.totalorder %s996_s15, %s996_s15 }
  0x40   : > { %p999_p7 = pnand %p997_p5, %p1330_p13  ;;  %p1006_p1 = por %p1005_p0, %p1004_p12 }
  0x42   : > { %p1000_p9 = pneg %p999_p7 }
  0x44   : > { %p1007_p4 = pnand %p1006_p1, %p1000_p9 }
  0x46   : > { %1010 = shalt.err (!%p1007_p4)
}
  0x47   : > { %862 = dma.hbm_to_vmem [thread:$0]  (!%p1314_p11), %s1608_s2, 256, %s1318_s18, [#allocation6], %s1196_s22, %s1196_s22, %s1197_s23  }
  0x48   : > { %s1011_s30 = scalar_lea.hbm %s1609_s3, 512 }
  0x49   : > { %p1012_p6 = scmp.ne.s32.totalorder %s1609_s3, %s1011_s30  ;;  %p1018_p5 = scmp.lt.u32.totalorder %s1011_s30, %s1609_s3 }
  0x4b   : > { %p1014_p10 = pnand %p1012_p6, %p1330_p13 }
  0x4d   : > { %p1015_p3 = pneg %p1014_p10 }
  0x4f   : > { %p1020_p7 = pnand %p1018_p5, %p1015_p3 }
  0x51   : > { %1023 = shalt.err (!%p1020_p7)
}
  0x52   : > { %s1024_s15 = scalar_lea.vmem %s290_s20, 512  ;;  %p1032_p1 = scmp.lt.s32.totalorder %s290_s20, %s290_s20 }
  0x53   : > { %p1025_p9 = scmp.ne.s32.totalorder %s290_s20, %s1024_s15  ;;  %p1033_p4 = scmp.lt.s32.totalorder %s1024_s15, %s1024_s15 }
  0x55   : > { %p1027_p12 = pnand %p1025_p9, %p1330_p13  ;;  %p1034_p8 = por %p1033_p4, %p1032_p1 }
  0x57   : > { %p1028_p0 = pneg %p1027_p12 }
  0x59   : > { %p1035_p2 = pnand %p1034_p8, %p1028_p0 }
  0x5b   : > { %1038 = shalt.err (!%p1035_p2)
}
  0x5c   : > { %s1198_s18 = smov 64   ;;  %s1199_s14 = smov 4  }
  0x5d   : > { %865 = dma.hbm_to_vmem [thread:$0]  (!%p1314_p11), %s1609_s3, 512, %s290_s20, [#allocation9], %s1198_s18, %s1198_s18, %s1199_s14  }
  0x5e   : > { %s50_s5 = sadd.s32 1, %s1179_s26  ;;  %s41_s6 = sadd.s32 1, %s1187_s28 }
  0x5f   : > { %p57_p2 = scmp.ne.s32.totalorder %s1179_s26, %s1175_s25  ;;  %p43_p8 = scmp.ge.s32.totalorder %s41_s6, 2 }
  0x60   : > { %p58_p13 = scmp.eq.s32.totalorder %s1191_s29, 0  ;;  %p1632_p6 = scmp.ne.s32.totalorder %s1625_s10, 0 }
  0x61   : > { %p880_p3 = scmp.lt.s32.totalorder %s1191_s29, 2  ;;  %s1650_s6 = smov (%p43_p8, %s41_s6), 0 }
  0x62   : > { %p1403_p10 = por %p1632_p6, %p57_p2  ;;  %p59_p5 = por %p58_p13, %p57_p2 }
  0x63   : > { %s309_s16 = sand.u32 1, %s1179_s26   ;;  %s45_s12 = ssub.s32 %s1187_s28, %s1650_s6 }
  0x64   : > { %p48_p7 = scmp.eq.s32.totalorder %s45_s12, 0  ;;  %s784_s20 = sshll.u32 %s309_s16, 3 }
  0x65   : > { %s814_s30 = sshll.u32 %s1187_s28, 7  ;;  %s313_s21 = scalar_lea.vmem [#allocation2], %s784_s20 }
  0x66   : > { %s1415_s8 = scalar_select %p48_p7, %s1179_s26, %s50_s5  }
  0x67   : > { %s1420_s10 = scalar_lea.hbm %s1606_s0, %s814_s30  ;;  %s322_s15 = sshll.u32 %s313_s21, 4  ;;  %s1422_s15 = int_to_ptr.vmem [resolvable:$true] %s322_s15 }
  0x68   : > { %p1426_p11 = pnand %p880_p3, %p59_p5  ;;  %s1430_s23 = scalar_lea.sflag [#allocation3], %s309_s16 }
  0x69   : > { %s1039_s5 = scalar_lea.hbm %s1420_s10, 128  ;;  %s1044_s30 = scalar_lea.hbm %s1606_s0, 256 }
  0x6a   : > { %p1040_p9 = scmp.ne.s32.totalorder %s1420_s10, %s1039_s5  ;;  %p1041_p12 = pneg %p1426_p11 }
  0x6b   : > { %p1045_p4 = scmp.lt.u32.totalorder %s1420_s10, %s1606_s0  ;;  %p1046_p2 = scmp.lt.u32.totalorder %s1044_s30, %s1039_s5 }
  0x6c   : > { %p1042_p0 = pnand %p1041_p12, %p1040_p9  ;;  %p1048_p13 = scmp.lt.u32.totalorder %s1039_s5, %s1420_s10 }
  0x6d   : > { %p1047_p8 = por %p1046_p2, %p1045_p4 }
  0x6e   : > { %p1043_p1 = pneg %p1042_p0 }
  0x6f   : > { %p1049_p6 = por %p1048_p13, %p1047_p8 }
  0x71   : > { %p1050_p3 = pnand %p1049_p6, %p1043_p1 }
  0x73   : > { %1053 = shalt.err (!%p1050_p3)
}
  0x74   : > { %s1054_s16 = scalar_lea.vmem %s1422_s15, 128  ;;  %s1200_s21 = smov [#allocation2]  }
  0x75   : > { %p1055_p5 = scmp.ne.s32.totalorder %s1422_s15, %s1054_s16  ;;  %s1059_s12 = sshll.u32 %s1200_s21, 4  ;;  %s1060_s12 = int_to_ptr.vmem [resolvable:$false] %s1059_s12 }
  0x76   : > { %s1061_s20 = scalar_lea.vmem %s1060_s12, 256  ;;  %p1062_p0 = scmp.lt.s32.totalorder %s1422_s15, %s1060_s12 }
  0x77   : > { %p1057_p7 = pnand %p1055_p5, %p1041_p12  ;;  %p1063_p4 = scmp.lt.s32.totalorder %s1061_s20, %s1054_s16 }
  0x79   : > { %p1058_p9 = pneg %p1057_p7  ;;  %p1064_p2 = por %p1063_p4, %p1062_p0 }
  0x7b   : > { %p1065_p8 = pnand %p1064_p2, %p1058_p9 }
  0x7d   : > { %1068 = shalt.err (!%p1065_p8)
}
  0x7e   : > { %869 = dma.hbm_to_vmem [thread:$0]  (!%p1426_p11), %s1420_s10, 128, %s1422_s15, %s1430_s23, %s1198_s18, %s1198_s18, %s1199_s14  }
  0x7f   : > { %p1635_p12 = scmp.ne.s32.totalorder %s1629_s13, 0 }
  0x80   : > { %s1464_s5 = sand.u32 (!%p1635_p12), 1, %s1175_s25   ;;  %p1636_p1 = scmp.ne.s32.totalorder (!%p1635_p12), %s1626_s11, 0 }
  0x81   : > { %334 = sbr.rel (%p1635_p12) target bundleno = 710 (0x2c6), region = 44  ;;  %s1467_s30 = sshll.u32 (!%p1635_p12), %s1464_s5, 3 }
  0x82   : > { %s337_s22 = scalar_lea.sflag (!%p1635_p12), [#allocation3], %s1464_s5  ;;  %s340_s17 = scalar_lea.vmem (!%p1635_p12), [#allocation2], %s1467_s30 }
  0x88   : > { %1150 = dma.done.wait (%p1636_p1), %s337_s22, 128  }
  0x89   : > { %1152 = vsyncadd (%p1636_p1), %s337_s22, 4294967168  ;;  %p1637_p11 = scmp.ne.s32.totalorder %s1624_s9, 0 }
  0x8b   : > { %1154 = dma.done.wait (%p1637_p11), [#allocation6], 512  }
  0x8c   : > { %1156 = vsyncadd (%p1637_p11), [#allocation6], 4294966784 }
  0x8d   : > { %1158 = dma.done.wait (%p1637_p11), [#allocation9], 512  }
  0x8e   : > { %1160 = vsyncadd (%p1637_p11), [#allocation9], 4294966784  ;;  %v1201_v0 = vmov 0.0   ;;  %vm1202_vm0 = vmmov 0   ;;  %v946_v1 = vld [vmem:[#allocation8] sm:$0xff]   ;;  %v947_v2 = vld [vmem:[#allocation8 + $0x8] sm:$0xff]  }
  0x8f   : > { %826 = vmatprep.subr.bf16.mxu0 %v1201_v0  ;;  %834 = vmatprep.mubr.msk.bf16.mxu0 %vm1202_vm0, %v1201_v0  ;;  %v535_v3 = vld [vmem:[#allocation7] sm:$0xff]  ;;  %s1203_s11 = smov 80   ;;  %v536_v5 = vld [vmem:[#allocation7 + $0x8] sm:$0xff]  ;;  %v523_v7 = vld [vmem:[#allocation5] sm:$0xff]  ;;  %vm433_vm1 = vcmask 523264   ;;  %s1204_s9 = smov 64  }
  0x90   : > { %827 = vmatpush3.bf16.msra.mxu0 %v946_v1  ;;  %v948_v4 = vld [vmem:[#allocation8 + $0x10] sm:$0xff]   ;;  %539 = vrot.lane.b32.xlu0 %v535_v3, %s1203_s11  ;;  %v949_v6 = vld [vmem:[#allocation8 + $0x18] sm:$0xff]   ;;  %s1205_s13 = smov 112   ;;  %v524_v19 = vld [vmem:[#allocation5 + $0x8] sm:$0xff]  ;;  %vm580_vm2 = vcmask 125952   ;;  %s387_s18 = scalar_lea.vmem [#allocation11], %s1467_s30 }
  0x91   : > { %828 = vmatprep.subr.bf16.mxu0 %v1201_v0  ;;  %v950_v8 = vld [vmem:[%s340_s17] sm:$0xff]   ;;  %s622_s14 = sshll.u32 %s387_s18, 4  ;;  %s819_s10 = sshll.u32 %s1183_s27, 7  ;;  %s1502_s14 = int_to_ptr.vmem [resolvable:$true] %s622_s14 }
  0x92   : > { %s1509_s19 = scalar_lea.hbm %s1613_s7, %s819_s10  ;;  %s589_s16 = scalar_lea.sflag [#allocation12], %s1464_s5 }
  0x93   : > { %s1069_s21 = scalar_lea.vmem %s1502_s14, 128  ;;  %s1206_s12 = smov [#allocation11]  }
  0x94   : > { %829 = vmatpush3.bf16.msra.mxu0 %v947_v2  ;;  %541 = vrot.lane.b32.xlu0 %v536_v5, %s1203_s11  ;;  %p1070_p13 = scmp.ne.s32.totalorder %s1502_s14, %s1069_s21  ;;  %s1073_s20 = sshll.u32 %s1206_s12, 4  ;;  %s1074_s20 = int_to_ptr.vmem [resolvable:$false] %s1073_s20 }
  0x95   : > { %830 = vmatprep.subr.bf16.mxu0 %v1201_v0  ;;  %s1075_s22 = scalar_lea.vmem %s1074_s20, 256  ;;  %p1076_p5 = scmp.lt.s32.totalorder %s1502_s14, %s1074_s20 }
  0x96   : > { %p1071_p6 = pnand %p1070_p13, %p1403_p10  ;;  %p1077_p7 = scmp.lt.s32.totalorder %s1075_s22, %s1069_s21 }
  0x98   : > { %831 = vmatpush3.bf16.msra.mxu0 %v948_v4  ;;  %527 = vrot.lane.b32.xlu0 %v523_v7, %s1204_s9  ;;  %p1072_p3 = pneg %p1071_p6  ;;  %p1078_p9 = por %p1077_p7, %p1076_p5 }
  0x99   : > { %832 = vmatprep.subr.bf16.mxu0 %v1201_v0 }
  0x9a   : > { %p1079_p0 = pnand %p1078_p9, %p1072_p3 }
  0x9c   : > { %833 = vmatpush3.bf16.msra.mxu0 %v949_v6 }
  0x9f   : > { %835 = vmatmul.mubr.msk.bf16.vlgmr.msra.gmra.mrb[0].mxu0 %vm433_vm1, %v950_v8 }
 0x102   : > { %v540_v9 = vpop.permute.xlu0 %539 }
 0x106   : > { %v542_v16 = vpop.permute.xlu0 %541 }
 0x10a   : > { %v528_v30 = vpop.permute.xlu0 %527 }
 0x172   : > { %v471_v10 = vpop.f32.mrb[0].mxu0 }
 0x173   : > { %v836_v11 = vpop.f32.mrb[1].mxu0  ;;  %v478_v12 = vsel %vm433_vm1, %v471_v10, 0.0  ;;  %v545_v13 = vmul.f32 %v540_v9, %v471_v10  ;;  %v533_v34 = vmul.f32 %v528_v30, %v471_v10 }
 0x174   : > { %479 = vadd.xlane.f32.xlu1 %v478_v12  ;;  %v474_v14 = vpop.f32.mrb[2].mxu0 }
 0x175   : > { %549 = vrot.lane.b32.xlu0 %v545_v13, %s1205_s13  ;;  %v837_v15 = vpop.f32.mrb[3].mxu0  ;;  %v481_v17 = vsel %vm433_vm1, %v474_v14, 0.0  ;;  %v546_v18 = vmul.f32 %v542_v16, %v474_v14 }
 0x178   : > { %482 = vadd.xlane.f32.xlu1 %v481_v17 }
 0x179   : > { %551 = vrot.lane.b32.xlu0 %v546_v18, %s1205_s13 }
 0x189   : > { %529 = vrot.lane.b32.xlu1 %v524_v19, %s1204_s9 }
 0x1e7   : > { %v550_v31 = vpop.permute.xlu0 %549 }
 0x1e8   : > { %v555_v37 = vadd.f32 %v550_v31, %v533_v34 }
 0x1ea   : > { %v817_v39 = vpack.c.bf16 %v555_v37, %v555_v37 }
 0x1eb   : > { %v552_v35 = vpop.permute.xlu0 %551 }
 0x201   : > { %v480_v20 = vpop.xlane.xlu1 %479 }
 0x202   : > { %v485_v21 = vmul.f32 0.015625, %v480_v20 }
 0x204   : > { %v1488_v22 = vsub.f32 %v471_v10, %v485_v21 }
 0x205   : > { %v483_v23 = vpop.xlane.xlu1 %482 }
 0x206   : > { %v486_v24 = vmul.f32 0.015625, %v483_v23  ;;  %v489_v25 = vmul.f32 %v1488_v22, %v1488_v22 }
 0x208   : > { %v1492_v26 = vsub.f32 %v474_v14, %v486_v24  ;;  %v491_v27 = vsel %vm433_vm1, %v489_v25, 0.0 }
 0x209   : > { %492 = vadd.xlane.f32.xlu0 %v491_v27  ;;  %v530_v32 = vpop.permute.xlu1 %529 }
 0x20a   : > { %v490_v28 = vmul.f32 %v1492_v26, %v1492_v26  ;;  %v534_v33 = vmul.f32 %v530_v32, %v474_v14 }
 0x20c   : > { %v494_v29 = vsel %vm433_vm1, %v490_v28, 0.0  ;;  %v556_v36 = vadd.f32 %v552_v35, %v534_v33 }
 0x20d   : > { %495 = vadd.xlane.f32.xlu1 %v494_v29 }
 0x20e   : > { %v818_v38 = vpack.c.bf16 %v556_v36, %v556_v36 }
 0x21e   : > { %576 = vrot.lane.b32.xlu1 %v818_v38, %s1204_s9 }
 0x21f   : > { %574 = vrot.lane.b32.xlu0 %v817_v39, %s1204_s9 }
 0x296   : > { %v493_v40 = vpop.xlane.xlu0 %492 }
 0x297   : > { %v497_v41 = vmul.f32 0.015625, %v493_v40 }
 0x299   : > { %v499_v42 = vadd.f32 1e-05, %v497_v41 }
 0x29a   : > { %v575_v43 = vpop.permute.xlu0 %574  ;;  %v496_v44 = vpop.xlane.xlu1 %495 }
 0x29b   : > { %951 = vrsqrt.f32 %v499_v42  ;;  %581 = vst.msk [vmem:[%s387_s18] sm:$0xf] %vm580_vm2, %v575_v43  ;;  %v498_v45 = vmul.f32 0.015625, %v496_v44 }
 0x29d   : > { %v500_v46 = vadd.f32 1e-05, %v498_v45 }
 0x29e   : > { %v577_v47 = vpop.permute.xlu1 %576 }
 0x29f   : > { %953 = vrsqrt.f32 %v500_v46  ;;  %582 = vst.msk [vmem:[%s387_s18 + $0x4] sm:$0xf] %vm580_vm2, %v577_v47 }
 0x2a0   : > { %1082 = shalt.err (!%p1079_p0)
}
 0x2a1   : > { %s1083_s17 = scalar_lea.hbm %s1509_s19, 128  ;;  %s1087_s18 = scalar_lea.hbm %s1613_s7, 256 }
 0x2a2   : > { %p1084_p4 = scmp.ne.s32.totalorder %s1509_s19, %s1083_s17  ;;  %p1088_p12 = scmp.lt.u32.totalorder %s1509_s19, %s1613_s7 }
 0x2a3   : > { %p1089_p1 = scmp.lt.u32.totalorder %s1087_s18, %s1083_s17  ;;  %p1091_p13 = scmp.lt.u32.totalorder %s1083_s17, %s1509_s19 }
 0x2a4   : > { %p1085_p2 = pnand %p1084_p4, %p1403_p10 }
 0x2a5   : > { %p1090_p11 = por %p1089_p1, %p1088_p12 }
 0x2a6   : > { %p1086_p8 = pneg %p1085_p2 }
 0x2a7   : > { %p1092_p6 = por %p1091_p13, %p1090_p11 }
 0x2a9   : > { %p1093_p3 = pnand %p1092_p6, %p1086_p8 }
 0x2ab   : > { %1096 = shalt.err (!%p1093_p3)
}
 0x2ac   : > { %s1207_s21 = smov 4   ;;  %v952_v48 = vpop.eup %951  ;;  %v800_v49 = vld [vmem:[%s1610_s4] ss:$0 sm:$0xff]  ;;  %s1638_s11 = sld [smem:[#allocation20_spill]]  ;;  %vm565_vm3 = vcmask 519168  }
 0x2ad   : > { %853 = dma.vmem_to_hbm [thread:$0]  (%p1403_p10), %s1502_s14, 128, %s1509_s19, %s589_s16, %s1204_s9, %s1204_s9, %s1207_s21   ;;  %v503_v50 = vmul.f32 %v952_v48, %v1488_v22  ;;  %v954_v53 = vpop.eup %953 }
 0x2ae   : > { %v504_v55 = vmul.f32 %v954_v53, %v1492_v26  ;;  %s380_s14 = scalar_lea.vmem [#allocation10], %s1467_s30  ;;  %s1639_s18 = sld [smem:[#allocation21_spill]] }
 0x2af   : > { %v512_v52 = vmul.f32 %v800_v49, %v503_v50  ;;  %s604_s19 = sshll.u32 %s380_s14, 4  ;;  %s584_s23 = scalar_lea.sflag [#allocation4], %s1464_s5  ;;  %s1554_s19 = int_to_ptr.vmem [resolvable:$true] %s604_s19 }
 0x2b0   : > { %v513_v57 = vmul.f32 %v800_v49, %v504_v55  ;;  %s1097_s12 = scalar_lea.vmem %s1554_s19, 128  ;;  %s1208_s30 = smov [#allocation10]  }
 0x2b1   : > { %p1098_p5 = scmp.ne.s32.totalorder %s1554_s19, %s1097_s12  ;;  %s1101_s20 = sshll.u32 %s1208_s30, 4  ;;  %s1102_s20 = int_to_ptr.vmem [resolvable:$false] %s1101_s20 }
 0x2b2   : > { %v801_v51 = vld [vmem:[%s1638_s11] ss:$0 sm:$0xff]  ;;  %s1103_s27 = scalar_lea.vmem %s1102_s20, 256  ;;  %p1104_p0 = scmp.lt.s32.totalorder %s1554_s19, %s1102_s20 }
 0x2b3   : > { %v521_v54 = vadd.f32 %v801_v51, %v512_v52  ;;  %v522_v58 = vadd.f32 %v801_v51, %v513_v57  ;;  %p1099_p7 = pnand %p1098_p5, %p1403_p10  ;;  %p1105_p4 = scmp.lt.s32.totalorder %s1103_s27, %s1097_s12 }
 0x2b4   : > { %s1552_s15 = scalar_lea.hbm %s1639_s18, %s819_s10 }
 0x2b5   : > { %v815_v56 = vpack.c.bf16 %v521_v54, %v521_v54  ;;  %v816_v59 = vpack.c.bf16 %v522_v58, %v522_v58  ;;  %p1100_p9 = pneg %p1099_p7  ;;  %p1106_p2 = por %p1105_p4, %p1104_p0 }
 0x2b7   : > { %566 = vst.msk [vmem:[%s380_s14] sm:$0xf] %vm565_vm3, %v815_v56  ;;  %567 = vst.msk [vmem:[%s380_s14 + $0x4] sm:$0xf] %vm565_vm3, %v816_v59  ;;  %p1107_p8 = pnand %p1106_p2, %p1100_p9 }
 0x2b9   : > { %1110 = shalt.err (!%p1107_p8)
}
 0x2ba   : > { %s1111_s10 = scalar_lea.hbm %s1552_s15, 128  ;;  %s1115_s11 = scalar_lea.hbm %s1639_s18, 256 }
 0x2bb   : > { %p1112_p12 = scmp.ne.s32.totalorder %s1552_s15, %s1111_s10  ;;  %p1116_p13 = scmp.lt.u32.totalorder %s1552_s15, %s1639_s18 }
 0x2bc   : > { %p1117_p6 = scmp.lt.u32.totalorder %s1115_s11, %s1111_s10  ;;  %p1119_p5 = scmp.lt.u32.totalorder %s1111_s10, %s1552_s15 }
 0x2bd   : > { %p1113_p1 = pnand %p1112_p12, %p1403_p10 }
 0x2be   : > { %p1118_p3 = por %p1117_p6, %p1116_p13 }
 0x2bf   : > { %p1114_p11 = pneg %p1113_p1 }
 0x2c0   : > { %p1120_p7 = por %p1119_p5, %p1118_p3 }
 0x2c2   : > { %p1121_p9 = pnand %p1120_p7, %p1114_p11 }
 0x2c4   : > { %1124 = shalt.err (!%p1121_p9)
}
 0x2c5   : > { %852 = dma.vmem_to_hbm [thread:$0]  (%p1403_p10), %s1554_s19, 128, %s1552_s15, %s584_s23, %s1204_s9, %s1204_s9, %s1207_s21  }
 0x2c6 PF: > { %s1640_s13 = sld [smem:[#allocation18_spill]]  ;;  %s1641_s12 = sld [smem:[#allocation19_spill]] }
 0x2c7   : > { %p1643_p4 = scmp.ge.s32.totalorder %s1191_s29, 2 }
 0x2cc   : > { %s637_s30 = sand.u32 1, %s1640_s13   ;;  %p1642_p0 = scmp.ne.s32.totalorder %s1641_s12, 0 }
 0x2cd   : > { %s638_s20 = scalar_lea.sflag [#allocation4], %s637_s30 }
 0x2ce   : > { %p871_p2 = pnand %p1643_p4, %p1642_p0 }
 0x2d0   : > { %1162 = dma.done.wait (!%p871_p2), %s638_s20, 128  }
 0x2d1   : > { %1164 = vsyncadd (!%p871_p2), %s638_s20, 4294967168  ;;  %s647_s24 = scalar_lea.sflag [#allocation12], %s637_s30 }
 0x2d2   : > { %1166 = dma.done.wait (!%p871_p2), %s647_s24, 128  }
 0x2d3   : > { %1168 = vsyncadd (!%p871_p2), %s647_s24, 4294967168  ;;  %s29_s29 = sadd.s32 1, %s1191_s29   ;;  %s1644_s24 = smov %s1175_s25 }
 0x2d4   : > { %p26_p8 = scmp.ge.s32.totalorder %s29_s29, 4   ;;  %s1645_s25 = smov %s1179_s26 }
 0x2d5   : > { %s1646_s26 = smov %s1415_s8  ;;  %s1647_s27 = smov %s1187_s28 }
 0x2d6   : > { %s1648_s28 = smov %s1650_s6  ;;  %28 = sbr.rel (!%p26_p8) target bundleno = 13 (0xd), region = 120 }
 0x2dd   :  { %652 = vsyncpa [#allocation3], 1 }
 0x2de   :  { %654 = vsyncpa [#allocation3 + $0x1], 1 }
 0x2df   :  { %655 = vsyncpa [#allocation6], 1 }
 0x2e0   :  { %656 = vsyncpa [#allocation9], 1 }
 0x2e1   :  { %657 = vsyncpa [#allocation4], 1 }
 0x2e2   :  { %659 = vsyncpa [#allocation4 + $0x1], 1 }
 0x2e3   :  { %660 = vsyncpa [#allocation12], 1 }
 0x2e4   :  { %662 = vsyncpa [#allocation12 + $0x1], 1 }

</bundles_post_ra>
